<compile_context>
chip_gen: v7x
topology: tpu7x:2x2x1
jax: 0.10.0
libtpu: 0.0.40
codegen_flags: <defaults>
</compile_context>

<pallas_src>
import jax
import jax.numpy as jnp
from jax.experimental import pallas as pl
from jax.experimental.pallas import tpu as pltpu

LN_EPS = 1e-5  # PyTorch nn.LayerNorm default


def _round_up(x: int, m: int) -> int:
    return (x + m - 1) // m * m


def _default_tn() -> int:
    try:
        kind = jax.devices()[0].device_kind.lower()
    except Exception:
        return 1024
    if "v7" in kind or "7x" in kind:
        return 2048   # v7x: 3.2 TB/s -> larger tiles needed to hide the ~0.35us/step cost
    return 1024       # v5e / v6e


def prepare_text_decoder_params(emb_table, pos_emb, ln_gamma, ln_beta, *,
                                compute_dtype=jnp.bfloat16, tn=None):
    """One-time (model-load) prep: cast, transpose and zero-pad the vocab table; pack LN params."""
    V, D = emb_table.shape
    if tn is None:
        tn = _default_tn()
    tn = max(128, _round_up(min(tn, _round_up(V, 128)), 128))
    Vp = _round_up(V, tn)
    # (D, Vp) bf16, zero-padded columns -- done once, amortized across every forward call.
    w_t = jnp.pad(emb_table.T.astype(compute_dtype), ((0, 0), (0, Vp - V)))
    return dict(
        emb_table=emb_table,
        pos_emb=pos_emb,
        w_t=w_t,
        gamma=ln_gamma.reshape(1, D).astype(jnp.float32),
        beta=ln_beta.reshape(1, D).astype(jnp.float32),
        V=V, Vp=Vp, D=D, tn=tn, compute_dtype=compute_dtype)


def _make_head_kernel(V, tn, masked, compute_dtype):
    """Fused LayerNorm + logits tile: o[i,j] = LN(x_i) @ W[:, j*tn:(j+1)*tn]."""
    def kernel(x_ref, g_ref, b_ref, w_ref, o_ref):
        # LayerNorm prologue in f32, recomputed per vocab tile: VPU/EUP work that the HBM-bound
        # weight stream hides; keeps all grid points independent (both axes "parallel").
        xf = x_ref[...].astype(jnp.float32)
        mean = jnp.mean(xf, axis=-1, keepdims=True)
        var = jnp.mean(jnp.square(xf - mean), axis=-1, keepdims=True)
        xln = (xf - mean) * jax.lax.rsqrt(var + LN_EPS) * g_ref[...] + b_ref[...]
        # NN matmul (no in-kernel transpose), bf16 operands, f32 accumulation on the MXU.
        acc = jnp.dot(xln.astype(compute_dtype), w_ref[...],
                      preferred_element_type=jnp.float32)
        if masked:
            # Mask padded vocab columns to -inf so padded logits are safe for argmax/softmax.
            col = pl.program_id(1) * tn + jax.lax.broadcasted_iota(jnp.int32, acc.shape, 1)
            acc = jnp.where(col < V, acc, -jnp.inf)
        o_ref[...] = acc
    return kernel


def text_decoder_forward(tokens, xa, params, mask=None, *,
                         tm_cap=512, last_token_only=False, return_padded=False):
    """JAX/Pallas equivalent of TextDecoderTRT.forward(x=tokens, xa=audio_features)."""
    del mask  # consumed only by the opaque TRT decoder blocks (identity here, see TODO below)
    V, Vp, D, tn = params["V"], params["Vp"], params["D"], params["tn"]
    compute_dtype = params["compute_dtype"]
    B, T = tokens.shape

    # --- token embedding gather + positional add (XLA fuses into one pass) ---
    x = jnp.take(params["emb_table"], tokens.reshape(-1), axis=0).reshape(B, T, D)
    x = (x + params["pos_emb"][:T][None]).astype(xa.dtype)   # x = x.to(xa.dtype)

    # TODO(synk): self.blocks (the whisper ResidualAttentionBlocks inside the torch2trt engine,
    # which consume xa and mask) are opaque in the spec; passed through as identity.

    if last_token_only:   # decode fast path: only the final position's logits are needed
        x = x[:, -1:, :]
    T_out = x.shape[1]
    BT = B * T_out
    x = x.reshape(BT, D)

    # --- row tiling: keep BT (nearly) resident so W streams nm = ceil(BT/tm_cap) times ---
    nm = -(-BT // tm_cap)
    tm = _round_up(-(-BT // nm), 16)            # 16-row multiples (bf16 sublane packing on v5e)
    BTp = tm * nm
    if BTp != BT:
        x = jnp.pad(x, ((0, BTp - BT), (0, 0)))
    nv = Vp // tn

    # --- VMEM budget from the actual (double-buffered) tiles; 48 MiB cap is v7x-safe ---
    xb = jnp.dtype(x.dtype).itemsize
    wb = jnp.dtype(compute_dtype).itemsize
    needed = 2 * (tm * D * xb + D * tn * wb + tm * tn * 4) + 4 * D * 4
    vmem_bytes = int(min(max(needed + (8 << 20), 16 << 20), 48 << 20))

    cost = pl.CostEstimate(
        flops=2 * BTp * Vp * D,
        transcendentals=0,
        bytes_accessed=nm * D * Vp * wb + BTp * D * xb + BTp * Vp * 4)

    kernel = _make_head_kernel(V, tn, Vp != V, compute_dtype)
    logits = pl.pallas_call(
        kernel,
        out_shape=jax.ShapeDtypeStruct((BTp, Vp), jnp.float32),
        grid_spec=pltpu.PrefetchScalarGridSpec(
            num_scalar_prefetch=0,
            grid=(nm, nv),                                            # vocab axis innermost
            in_specs=[pl.BlockSpec((tm, D), lambda i, j: (i, 0)),     # x tile resident across j
                      pl.BlockSpec((1, D), lambda i, j: (0, 0)),      # gamma (loaded once)
                      pl.BlockSpec((1, D), lambda i, j: (0, 0)),      # beta  (loaded once)
                      pl.BlockSpec((D, tn), lambda i, j: (0, j))],    # W streamed once per i
            out_specs=pl.BlockSpec((tm, tn), lambda i, j: (i, j))),
        compiler_params=pltpu.CompilerParams(
            dimension_semantics=("parallel", "parallel"),  # v7x megacore shards the vocab stream
            vmem_limit_bytes=vmem_bytes),
        cost_estimate=cost,
    )(x, params["gamma"], params["beta"], params["w_t"])

    if return_padded:
        # Lane-dense padded vocab axis (pad columns already -inf); only the cheap row slice.
        return logits[:BT].reshape(B, T_out, Vp)
    return logits[:BT, :V].reshape(B, T_out, V)


def reference_forward(tokens, xa, emb_table, pos_emb, ln_gamma, ln_beta,
                      compute_dtype=jnp.bfloat16):
    """Pure-JAX reference with the same numerics (engine = identity, bf16 matmul, f32 acc)."""
    B, T = tokens.shape
    x = (emb_table[tokens] + pos_emb[:T][None]).astype(xa.dtype)
    xf = x.astype(jnp.float32)
    mean = jnp.mean(xf, axis=-1, keepdims=True)
    var = jnp.mean(jnp.square(xf - mean), axis=-1, keepdims=True)
    xln = ((xf - mean) * jax.lax.rsqrt(var + LN_EPS) * ln_gamma + ln_beta).astype(compute_dtype)
    w = emb_table.astype(compute_dtype)
    out = jnp.dot(xln.reshape(-1, x.shape[-1]), w.T, preferred_element_type=jnp.float32)
    return out.reshape(B, T, -1)


if __name__ == "__main__":
    key = jax.random.PRNGKey(0)
    B, T, D, V, N_CTX, T_AUDIO = 2, 8, 32, 48, 16, 24
    k0, k1, k2, k3 = jax.random.split(key, 4)

    # Deterministic synthetic "checkpoint":
    emb_table = 0.02 * jax.random.normal(k0, (V, D), jnp.float32)      # token_embedding.weight
    pos_emb   = 0.02 * jax.random.normal(k1, (N_CTX, D), jnp.float32)  # positional_embedding
    ln_gamma  = jnp.ones((D,), jnp.float32)                            # ln.weight
    ln_beta   = jnp.zeros((D,), jnp.float32)                           # ln.bias
    mask = jnp.triu(jnp.full((N_CTX, N_CTX), float("-inf"), jnp.float32), k=1)

    tokens = jax.random.randint(k2, (B, T), 0, V, dtype=jnp.int32)     # x
    xa = jax.random.normal(k3, (B, T_AUDIO, D), jnp.float32)           # audio features

    # Model-load-time prep (cast + transpose + pad of the vocab table, amortized across calls).
    params = prepare_text_decoder_params(emb_table, pos_emb, ln_gamma, ln_beta)

    logits = text_decoder_forward(tokens, xa, params, mask)
    jax.block_until_ready(logits)

    ref = reference_forward(tokens, xa, emb_table, pos_emb, ln_gamma, ln_beta)
    assert logits.shape == (B, T, V) and logits.dtype == jnp.float32
    assert jnp.allclose(logits, ref, atol=1e-3, rtol=1e-3), float(jnp.abs(logits - ref).max())

    # Decode fast path: logits for the last position only.
    last = text_decoder_forward(tokens, xa, params, mask, last_token_only=True)
    jax.block_until_ready(last)
    assert last.shape == (B, 1, V)
    assert jnp.allclose(last, ref[:, -1:, :], atol=1e-3, rtol=1e-3)

    print("KERNEL_OK")
</pallas_src>

<mosaic_0001>
module attributes {stable_mosaic.version = 11 : i64} {
  func.func @kernel(%arg0: i32, %arg1: i32, %arg2: memref<16x32xf32, #tpu.memory_space<vmem>>, %arg3: memref<1x32xf32, #tpu.memory_space<vmem>>, %arg4: memref<1x32xf32, #tpu.memory_space<vmem>>, %arg5: memref<32x128xbf16, #tpu.memory_space<vmem>>, %arg6: memref<16x128xf32, #tpu.memory_space<vmem>>) attributes {dimension_semantics = [#tpu.dimension_semantics<parallel>, #tpu.dimension_semantics<parallel>], iteration_bounds = array<i64: 1, 1>, scalar_prefetch = 0 : i64, scratch_operands = 0 : i64, tpu.core_type = #tpu.core_type<tc>, window_params = [{transform_indices = @transform_0, window_bounds = array<i64: 16, 32>}, {pipeline_mode = #tpu.pipeline_mode<synchronous>, transform_indices = @transform_1, window_bounds = array<i64: 1, 32>}, {pipeline_mode = #tpu.pipeline_mode<synchronous>, transform_indices = @transform_2, window_bounds = array<i64: 1, 32>}, {transform_indices = @transform_3, window_bounds = array<i64: 32, 128>}, {transform_indices = @transform_4, window_bounds = array<i64: 16, 128>}]} {
    %c0 = arith.constant 0 : index
    %c0_0 = arith.constant 0 : index
    %0 = vector.load %arg2[%c0, %c0_0] : memref<16x32xf32, #tpu.memory_space<vmem>>, vector<16x32xf32>
    %cst = arith.constant dense<0.000000e+00> : vector<16xf32>
    %1 = vector.multi_reduction <add>, %0, %cst [1] : vector<16x32xf32> to vector<16xf32>
    %2 = vector.shape_cast %1 : vector<16xf32> to vector<16x1xf32>
    %cst_1 = arith.constant 3.200000e+01 : f32
    %3 = vector.broadcast %cst_1 : f32 to vector<16x1xf32>
    %4 = arith.divf %2, %3 : vector<16x1xf32>
    %5 = vector.broadcast %4 : vector<16x1xf32> to vector<16x32xf32>
    %6 = arith.subf %0, %5 : vector<16x32xf32>
    %7 = arith.mulf %6, %6 : vector<16x32xf32>
    %cst_2 = arith.constant dense<0.000000e+00> : vector<16xf32>
    %8 = vector.multi_reduction <add>, %7, %cst_2 [1] : vector<16x32xf32> to vector<16xf32>
    %9 = vector.shape_cast %8 : vector<16xf32> to vector<16x1xf32>
    %cst_3 = arith.constant 3.200000e+01 : f32
    %10 = vector.broadcast %cst_3 : f32 to vector<16x1xf32>
    %11 = arith.divf %9, %10 : vector<16x1xf32>
    %12 = vector.broadcast %4 : vector<16x1xf32> to vector<16x32xf32>
    %13 = arith.subf %0, %12 : vector<16x32xf32>
    %cst_4 = arith.constant 9.99999974E-6 : f32
    %14 = vector.broadcast %cst_4 : f32 to vector<16x1xf32>
    %15 = arith.addf %11, %14 : vector<16x1xf32>
    %16 = math.rsqrt %15 : vector<16x1xf32>
    %17 = vector.broadcast %16 : vector<16x1xf32> to vector<16x32xf32>
    %18 = arith.mulf %13, %17 : vector<16x32xf32>
    %c0_5 = arith.constant 0 : index
    %c0_6 = arith.constant 0 : index
    %19 = vector.load %arg3[%c0_5, %c0_6] : memref<1x32xf32, #tpu.memory_space<vmem>>, vector<1x32xf32>
    %20 = vector.broadcast %19 : vector<1x32xf32> to vector<16x32xf32>
    %21 = arith.mulf %18, %20 : vector<16x32xf32>
    %c0_7 = arith.constant 0 : index
    %c0_8 = arith.constant 0 : index
    %22 = vector.load %arg4[%c0_7, %c0_8] : memref<1x32xf32, #tpu.memory_space<vmem>>, vector<1x32xf32>
    %23 = vector.broadcast %22 : vector<1x32xf32> to vector<16x32xf32>
    %24 = arith.addf %21, %23 : vector<16x32xf32>
    %25 = arith.truncf %24 : vector<16x32xf32> to vector<16x32xbf16>
    %c0_9 = arith.constant 0 : index
    %c0_10 = arith.constant 0 : index
    %26 = vector.load %arg5[%c0_9, %c0_10] : memref<32x128xbf16, #tpu.memory_space<vmem>>, vector<32x128xbf16>
    %cst_11 = arith.constant dense<0.000000e+00> : vector<16x128xf32>
    %27 = tpu.matmul %25, %26, %cst_11 {dimension_numbers = #tpu.dot_dimension_numbers<[1], [0], [0], [1], [0, 0, 1, 1], [], []>} : vector<16x32xbf16>, vector<32x128xbf16>, vector<16x128xf32> -> vector<16x128xf32>
    %c128_i32 = arith.constant 128 : i32
    %28 = arith.muli %arg1, %c128_i32 : i32
    %29 = tpu.iota {dimensions = array<i32: 1>} : vector<16x128xi32>
    %30 = vector.broadcast %28 : i32 to vector<16x128xi32>
    %31 = arith.addi %30, %29 : vector<16x128xi32>
    %c48_i32 = arith.constant 48 : i32
    %32 = vector.broadcast %c48_i32 : i32 to vector<16x128xi32>
    %33 = arith.cmpi slt, %31, %32 : vector<16x128xi32>
    %cst_12 = arith.constant 0xFF800000 : f32
    %34 = vector.broadcast %cst_12 : f32 to vector<16x128xf32>
    %35 = arith.select %33, %27, %34 : vector<16x128xi1>, vector<16x128xf32>
    %c0_13 = arith.constant 0 : index
    %c0_14 = arith.constant 0 : index
    %36 = vector.load %arg6[%c0_13, %c0_14] : memref<16x128xf32, #tpu.memory_space<vmem>>, vector<16x128xf32>
    tpu.vector_store %arg6[%c0_13, %c0_14], %35 {strides = array<i32>} : memref<16x128xf32, #tpu.memory_space<vmem>>, vector<16x128xf32>,
    return
  }
  func.func @transform_0(%arg0: i32, %arg1: i32) -> (i32, i32) {
    %c0_i32 = arith.constant 0 : i32
    %c0_i32_0 = arith.constant 0 : i32
    return %arg0, %c0_i32 : i32, i32
  }
  func.func @transform_1(%arg0: i32, %arg1: i32) -> (i32, i32) {
    %c0_i32 = arith.constant 0 : i32
    %c0_i32_0 = arith.constant 0 : i32
    %c0_i32_1 = arith.constant 0 : i32
    return %c0_i32, %c0_i32_0 : i32, i32
  }
  func.func @transform_2(%arg0: i32, %arg1: i32) -> (i32, i32) {
    %c0_i32 = arith.constant 0 : i32
    %c0_i32_0 = arith.constant 0 : i32
    %c0_i32_1 = arith.constant 0 : i32
    return %c0_i32, %c0_i32_0 : i32, i32
  }
  func.func @transform_3(%arg0: i32, %arg1: i32) -> (i32, i32) {
    %c0_i32 = arith.constant 0 : i32
    %c0_i32_0 = arith.constant 0 : i32
    return %c0_i32, %arg1 : i32, i32
  }
  func.func @transform_4(%arg0: i32, %arg1: i32) -> (i32, i32) {
    %c0_i32 = arith.constant 0 : i32
    return %arg0, %arg1 : i32, i32
  }
}

</mosaic_0001>

<bundles_post_ra>
// kernel: tpu_custom_call.1
= control target key start
LH: loop header
LB: loop body
LE: loop exit
PB: predicated region body
PF: predicated region fallthrough
CT: control target
= control target key end

     0   :  { %9 = vsyncpa [#allocation3], 0  ;;  %s374_s0 = inlined_call_operand.hbm [shape: f32[16,32], index: 0, kind: input, shape index: {}]   ;;  %s375_s1 = inlined_call_operand.vmem [shape: f32[1,32], index: 1, kind: input, shape index: {}]   ;;  %s376_s2 = inlined_call_operand.vmem [shape: f32[1,32], index: 2, kind: input, shape index: {}]   ;;  %s377_s3 = inlined_call_operand.hbm [shape: bf16[32,128], index: 3, kind: input, shape index: {}]   ;;  %s378_s4 = inlined_call_operand.hbm [shape: f32[16,128], index: 4, kind: output, shape index: {}]  }
   0x1   :  { %10 = vsyncpa [#allocation6], 0 }
   0x2   :  { %11 = vsyncpa [#allocation4], 0  ;;  %s287_s15 = smov [#allocation2]   ;;  %s215_s19 = scalar_lea.hbm %s374_s0, 256 }
   0x3   :  { %s17_s16 = sshll.u32 %s287_s15, 4  ;;  %p216_p0 = scmp.ne.s32.totalorder %s374_s0, %s215_s19  ;;  %s18_s16 = int_to_ptr.vmem [resolvable:$true] %s17_s16 }
   0x4   :  { %p219_p1 = scmp.lt.u32.totalorder %s215_s19, %s374_s0 }
   0x6   :  { %p221_p2 = pnand %p219_p1, %p216_p0 }
   0x8   :  { %224 = shalt.err (!%p221_p2)
}
   0x9   :  { %s225_s24 = scalar_lea.vmem %s18_s16, 256  ;;  %p230_p4 = scmp.lt.s32.totalorder %s18_s16, %s18_s16 }
   0xa   :  { %p226_p3 = scmp.ne.s32.totalorder %s18_s16, %s225_s24  ;;  %p231_p5 = scmp.lt.s32.totalorder %s225_s24, %s225_s24 }
   0xc   :  { %p232_p6 = por %p231_p5, %p230_p4 }
   0xe   :  { %p233_p7 = pnand %p232_p6, %p226_p3 }
  0x10   :  { %236 = shalt.err (!%p233_p7)
}
  0x11   :  { %s288_s25 = smov 128   ;;  %s289_s26 = smov 8  }
  0x12   :  { %23 = dma.hbm_to_vmem [thread:$0]  %s374_s0, 256, %s18_s16, [#allocation3], %s288_s25, %s288_s25, %s289_s26  }
  0x13   :  { %s290_s29 = smov [#allocation5]   ;;  %s237_s7 = scalar_lea.hbm %s377_s3, 256 }
  0x14   :  { %s33_s30 = sshll.u32 %s290_s29, 4  ;;  %p238_p8 = scmp.ne.s32.totalorder %s377_s3, %s237_s7  ;;  %s34_s30 = int_to_ptr.vmem [resolvable:$true] %s33_s30 }
  0x15   :  { %p241_p9 = scmp.lt.u32.totalorder %s237_s7, %s377_s3 }
  0x17   :  { %p243_p10 = pnand %p241_p9, %p238_p8 }
  0x19   :  { %246 = shalt.err (!%p243_p10)
}
  0x1a   :  { %s247_s12 = scalar_lea.vmem %s34_s30, 256  ;;  %p252_p12 = scmp.lt.s32.totalorder %s34_s30, %s34_s30 }
  0x1b   :  { %p248_p11 = scmp.ne.s32.totalorder %s34_s30, %s247_s12  ;;  %p253_p13 = scmp.lt.s32.totalorder %s247_s12, %s247_s12 }
  0x1d   :  { %p254_p0 = por %p253_p13, %p252_p12 }
  0x1f   :  { %p255_p1 = pnand %p254_p0, %p248_p11 }
  0x21   :  { %258 = shalt.err (!%p255_p1)
}
  0x22   :  { %s291_s0 = smov 64   ;;  %s292_s13 = smov 4  }
  0x23   :  { %39 = dma.hbm_to_vmem [thread:$0]  %s377_s3, 256, %s34_s30, [#allocation6], %s291_s0, %s291_s0, %s292_s13  }
  0x24   :  { %281 = dma.done.wait [#allocation3], 256  }
  0x25   :  { %282 = vsyncadd [#allocation3], 4294967040 }
  0x26   :  { %283 = dma.done.wait [#allocation6], 256  }
  0x27   :  { %284 = vsyncadd [#allocation6], 4294967040  ;;  %vm49_vm0 = vcmask 261120   ;;  %v47_v0 = vld [vmem:[#allocation2] sm:$0xff]  ;;  %v48_v1 = vld [vmem:[#allocation2 + $0x8] sm:$0xff]  ;;  %v293_v15 = vmov 0.0   ;;  %v157_v34 = vlaneseq }
  0x28   :  { %v50_v2 = vsel %vm49_vm0, %v47_v0, 0.0  ;;  %v53_v3 = vsel %vm49_vm0, %v48_v1, 0.0  ;;  %v209_v14 = vld [vmem:[#allocation5] sm:$0xff]   ;;  %192 = vmatprep.subr.bf16.mxu0 %v293_v15  ;;  %v210_v16 = vld [vmem:[#allocation5 + $0x8] sm:$0xff]   ;;  %vm294_vm1 = vmmov 0   ;;  %s295_s19 = smov [#allocation7]  }
  0x29   :  { %51 = vadd.xlane.f32.xlu0 %v50_v2  ;;  %193 = vmatpush3.bf16.msra.mxu0 %v209_v14  ;;  %v184_v25 = vld [vmem:[%s375_s1] ss:$0 sm:$0xff]  ;;  %v158_v35 = vand.u32 127, %v157_v34  ;;  %s171_s20 = sshll.u32 %s295_s19, 4  ;;  %s172_s20 = int_to_ptr.vmem [resolvable:$true] %s171_s20 }
  0x2a   :  { %196 = vmatprep.mubr.msk.bf16.mxu0 %vm294_vm1, %v293_v15  ;;  %194 = vmatprep.subr.bf16.mxu0 %v293_v15  ;;  %v185_v29 = vld [vmem:[%s376_s2] ss:$0 sm:$0xff]  ;;  %s259_s1 = scalar_lea.vmem %s172_s20, 256  ;;  %p264_p3 = scmp.lt.s32.totalorder %s172_s20, %s172_s20 }
  0x2b   :  { %vm161_vm2 = vcmp.lt.s32.totalorder %v158_v35, 48  ;;  %p260_p2 = scmp.ne.s32.totalorder %s172_s20, %s259_s1  ;;  %p265_p4 = scmp.lt.s32.totalorder %s259_s1, %s259_s1 }
  0x2d   :  { %54 = vadd.xlane.f32.xlu0 %v53_v3  ;;  %195 = vmatpush3.bf16.msra.mxu0 %v210_v16  ;;  %p266_p5 = por %p265_p4, %p264_p3 }
  0x2f   :  { %p267_p6 = pnand %p266_p5, %p260_p2 }
  0xb6   :  { %v52_v4 = vpop.xlane.xlu0 %51 }
  0xb7   :  { %v57_v5 = vmul.f32 0.03125, %v52_v4 }
  0xb9   :  { %v59_v6 = vsub.f32 %v47_v0, %v57_v5 }
  0xba   :  { %v55_v7 = vpop.xlane.xlu0 %54 }
  0xbb   :  { %v58_v8 = vmul.f32 0.03125, %v55_v7  ;;  %v61_v9 = vmul.f32 %v59_v6, %v59_v6 }
  0xbd   :  { %v60_v10 = vsub.f32 %v48_v1, %v58_v8  ;;  %v63_v11 = vsel %vm49_vm0, %v61_v9, 0.0 }
  0xbe   :  { %64 = vadd.xlane.f32.xlu1 %v63_v11 }
  0xbf   :  { %v62_v12 = vmul.f32 %v60_v10, %v60_v10 }
  0xc1   :  { %v66_v13 = vsel %vm49_vm0, %v62_v12, 0.0 }
  0xc2   :  { %67 = vadd.xlane.f32.xlu1 %v66_v13 }
 0x14b   :  { %v65_v17 = vpop.xlane.xlu1 %64 }
 0x14c   :  { %v69_v18 = vmul.f32 0.03125, %v65_v17 }
 0x14e   :  { %v71_v19 = vadd.f32 1e-05, %v69_v18 }
 0x14f   :  { %v68_v20 = vpop.xlane.xlu1 %67 }
 0x150   :  { %211 = vrsqrt.f32 %v71_v19  ;;  %v70_v21 = vmul.f32 0.03125, %v68_v20 }
 0x152   :  { %v72_v22 = vadd.f32 1e-05, %v70_v21 }
 0x154   :  { %213 = vrsqrt.f32 %v72_v22 }
 0x15a   :  { %v212_v23 = vpop.eup %211 }
 0x15b   :  { %v75_v24 = vmul.f32 %v212_v23, %v59_v6 }
 0x15d   :  { %v84_v28 = vmul.f32 %v184_v25, %v75_v24 }
 0x15e   :  { %v214_v26 = vpop.eup %213 }
 0x15f   :  { %v76_v27 = vmul.f32 %v214_v26, %v60_v10  ;;  %v93_v31 = vadd.f32 %v185_v29, %v84_v28 }
 0x161   :  { %v85_v30 = vmul.f32 %v184_v25, %v76_v27 }
 0x163   :  { %v94_v32 = vadd.f32 %v185_v29, %v85_v30 }
 0x165   :  { %v95_v33 = vpack.c.bf16 %v94_v32, %v93_v31 }
 0x167   :  { %197 = vmatmul.mubr.msk.bf16.vlgmr.msra.gmra.mrb[0].mxu0 %vm49_vm0, %v95_v33 }
 0x23a   :  { %v149_v36 = vpop.f32.mrb[0].mxu0 }
 0x23b   :  { %v162_v37 = vsel %vm161_vm2, %v149_v36, -inf  ;;  %v198_v38 = vpop.f32.mrb[1].mxu0 }
 0x23c   :  { %164 = vst [vmem:[#allocation7] sm:$0xff] %v162_v37  ;;  %v152_v39 = vpop.f32.mrb[2].mxu0 }
 0x23d   :  { %v163_v40 = vsel %vm161_vm2, %v152_v39, -inf  ;;  %v199_v41 = vpop.f32.mrb[3].mxu0 }
 0x23e   :  { %165 = vst [vmem:[#allocation7 + $0x8] sm:$0xff] %v163_v40 }
 0x23f   :  { %270 = shalt.err (!%p267_p6)
}
 0x240   :  { %s271_s22 = scalar_lea.hbm %s378_s4, 256 }
 0x241   :  { %p272_p7 = scmp.ne.s32.totalorder %s378_s4, %s271_s22  ;;  %p275_p8 = scmp.lt.u32.totalorder %s271_s22, %s378_s4 }
 0x243   :  { %p277_p9 = pnand %p275_p8, %p272_p7 }
 0x245   :  { %280 = shalt.err (!%p277_p9)
}
 0x246   :  { %177 = dma.vmem_to_hbm [thread:$0]  %s172_s20, 256, %s378_s4, [#allocation4], %s288_s25, %s288_s25, %s289_s26  }
 0x247   :  { %285 = dma.done.wait [#allocation4], 256  }
 0x248   :  { %286 = vsyncadd [#allocation4], 4294967040 }
 0x249   :  { %181 = vsyncpa [#allocation3], 1 }
 0x24a   :  { %182 = vsyncpa [#allocation6], 1 }
 0x24b   :  { %183 = vsyncpa [#allocation4], 1 }

</bundles_post_ra>
